<compile_context>
chip_gen: v7x
topology: tpu7x:2x2x1
jax: 0.10.0
libtpu: 0.0.40
codegen_flags: <defaults>
</compile_context>

<pallas_src>
import functools

import numpy as np
import jax
import jax.numpy as jnp
from jax import lax
from jax.experimental import pallas as pl
from jax.experimental.pallas import tpu as pltpu


def _convblock_kernel(x_ref, w_ref, m_ref, o_ref, xpad_ref, stk_ref,
                      *, h, w, pad, block_n):
    """block_n samples: 3x3 conv (pad=1) -> InstanceNorm2d -> ReLU, lane-dense.

    x_ref   : (block_n, Cin, H*W)   flattened-spatial activations (f32)
    w_ref   : (Cout, 9*Cin)         stacked per-tap weights (bf16)
    m_ref   : (2, H*W)              column masks: [0]=left_ok, [1]=right_ok (f32)
    o_ref   : (block_n, Cout, H*W)  output (lane-dense stores)
    xpad_ref: (Cin, 2*pad + H*W)    VMEM scratch, lane-aligned halo pads (f32)
    stk_ref : (9*Cin, H*W)          VMEM scratch, im2col-stacked matmul operand
    """
    cin = x_ref.shape[1]
    hw = h * w
    eps = 1e-5
    inv_n = 1.0 / hw

    # Refresh the zero halos (two small lane-aligned stores).  Done every step
    # so the kernel stays correct when the "parallel" batch axis is sharded
    # across TensorCores (a program_id==0-only init would never run on core 1).
    zeros_halo = jnp.zeros((cin, pad), jnp.float32)
    xpad_ref[:, 0:pad] = zeros_halo
    xpad_ref[:, pad + hw:2 * pad + hw] = zeros_halo

    left_ok = m_ref[0:1, :]     # (1, H*W): 1.0 where column j-1 is in bounds
    right_ok = m_ref[1:2, :]    # (1, H*W): 1.0 where column j+1 is in bounds

    w_bf16 = w_ref[...]         # (Cout, 9*Cin), already bf16

    for b in range(block_n):
        # Drop the sample into the lane-aligned interior of the halo buffer.
        xpad_ref[:, pad:pad + hw] = x_ref[b]

        # Build the im2col-stacked operand: row t*Cin + c holds channel c
        # shifted for tap t = di*3 + dj.  Row (H) out-of-bounds reads land in
        # the zero halos; column (W) wrap is removed with the masks.
        for di in range(3):
            for dj in range(3):
                t = di * 3 + dj
                start = pad + (di - 1) * w + (dj - 1)
                shifted = xpad_ref[:, start:start + hw]        # (Cin, H*W)
                if dj == 0:
                    shifted = shifted * left_ok
                elif dj == 2:
                    shifted = shifted * right_ok
                stk_ref[t * cin:(t + 1) * cin, :] = shifted

        # One MXU matmul over the full contraction K = 9*Cin (bf16 operands,
        # f32 accumulation).  The Conv2d bias is intentionally omitted: it is
        # a mathematical no-op under InstanceNorm2d(affine=False).
        acc = jnp.dot(w_bf16, stk_ref[...].astype(jnp.bfloat16),
                      preferred_element_type=jnp.float32)      # (Cout, H*W)

        # InstanceNorm2d (affine=False): fused sum / sum-of-squares stats,
        # clamped variance (E[x^2]-E[x]^2 can go slightly negative).
        s1 = jnp.sum(acc, axis=1, keepdims=True)               # (Cout, 1)
        s2 = jnp.sum(acc * acc, axis=1, keepdims=True)         # (Cout, 1)
        mean = s1 * inv_n
        var = jnp.maximum(s2 * inv_n - mean * mean, 0.0)
        y = (acc - mean) * lax.rsqrt(var + eps)
        o_ref[b] = jnp.maximum(y, 0.0).astype(o_ref.dtype)


def _pick_block_n(n: int, target: int = 4) -> int:
    """Largest divisor of n that is <= target while keeping >= 2 grid steps
    (so dimension_semantics=("parallel",) can feed both v7x TensorCores)."""
    best = 1
    for bn in range(1, min(target, n) + 1):
        if n % bn == 0 and (n // bn >= 2 or n == 1):
            best = bn
    return best


def convblock_forward(x, weight, bias=None, *, block_n=None):
    """x: (N, Cin, H, W) f32; weight: (Cout, Cin, 3, 3); bias: (Cout,) (unused:
    exact no-op under InstanceNorm2d(affine=False))."""
    del bias
    n, cin, h, w = x.shape
    cout = weight.shape[0]
    hw = h * w
    # Lane-aligned halo pad; must cover the max flattened shift W + 1.
    pad = ((w + 1 + 127) // 128) * 128

    if block_n is None:
        block_n = _pick_block_n(n)
    grid_n = n // block_n

    x_flat = x.reshape(n, cin, hw)
    # (Cout, Cin, 3, 3) -> (Cout, 9*Cin), column index = (kh*3 + kw)*Cin + c,
    # matching the stacked-operand row order built inside the kernel.
    w_stk = jnp.transpose(weight, (0, 2, 3, 1)).reshape(cout, 9 * cin)
    w_stk = w_stk.astype(jnp.bfloat16)

    # Column-boundary masks (computed once, tiny constant input).
    col = jnp.arange(hw, dtype=jnp.int32) % w
    masks = jnp.stack([col > 0, col < (w - 1)]).astype(jnp.float32)  # (2, HW)

    out_flat = pl.pallas_call(
        functools.partial(_convblock_kernel, h=h, w=w, pad=pad,
                          block_n=block_n),
        out_shape=jax.ShapeDtypeStruct((n, cout, hw), jnp.float32),
        grid_spec=pltpu.PrefetchScalarGridSpec(
            num_scalar_prefetch=0,
            grid=(grid_n,),
            in_specs=[
                pl.BlockSpec((block_n, cin, hw), lambda i: (i, 0, 0)),
                pl.BlockSpec((cout, 9 * cin), lambda i: (0, 0)),
                pl.BlockSpec((2, hw), lambda i: (0, 0)),
            ],
            out_specs=pl.BlockSpec((block_n, cout, hw), lambda i: (i, 0, 0)),
            scratch_shapes=[
                pltpu.VMEM((cin, 2 * pad + hw), jnp.float32),   # halo buffer
                pltpu.VMEM((9 * cin, hw), jnp.float32),         # im2col stack
            ],
        ),
        compiler_params=pltpu.CompilerParams(
            dimension_semantics=("parallel",)),
    )(x_flat, w_stk, masks)
    return out_flat.reshape(n, cout, h, w)


def convblock_reference(x, weight, bias):
    """Pure-JAX reference with the PyTorch module's math (bias included)."""
    y = lax.conv_general_dilated(
        x, weight, window_strides=(1, 1), padding=((1, 1), (1, 1)),
        dimension_numbers=('NCHW', 'OIHW', 'NCHW'))
    y = y + bias[None, :, None, None]
    mean = jnp.mean(y, axis=(2, 3), keepdims=True)
    var = jnp.mean((y - mean) ** 2, axis=(2, 3), keepdims=True)
    y = (y - mean) * lax.rsqrt(var + 1e-5)
    return jnp.maximum(y, 0.0)


if __name__ == "__main__":
    key = jax.random.PRNGKey(0)
    kx, kw, kb = jax.random.split(key, 3)

    n, cin, cout, h, w = 2, 4, 8, 16, 16
    x = jax.random.normal(kx, (n, cin, h, w), dtype=jnp.float32)

    # Deterministic synthetic parameters (Conv2d-like fan-in scaling).
    fan_in = cin * 3 * 3
    bound = 1.0 / np.sqrt(fan_in)
    weight = jax.random.uniform(kw, (cout, cin, 3, 3), jnp.float32,
                                minval=-bound, maxval=bound)
    bias = jax.random.uniform(kb, (cout,), jnp.float32,
                              minval=-bound, maxval=bound)

    out = jax.block_until_ready(convblock_forward(x, weight, bias))
    ref = convblock_reference(x, weight, bias)

    # Tolerance covers the explicit single-pass bf16 MXU operands vs the f32
    # XLA convolution reference (expected error ~3e-3 on these unit-variance
    # normalized outputs); any structural/indexing bug would produce O(1)
    # errors, so 2e-2 still discriminates cleanly.
    np.testing.assert_allclose(np.asarray(out), np.asarray(ref),
                               atol=2e-2, rtol=2e-2)
    print("KERNEL_OK")
</pallas_src>

<mosaic_0001>
module attributes {stable_mosaic.version = 11 : i64} {
  func.func @_convblock_kernel(%arg0: i32, %arg1: memref<1x4x256xf32, #tpu.memory_space<vmem>>, %arg2: memref<8x36xbf16, #tpu.memory_space<vmem>>, %arg3: memref<2x256xf32, #tpu.memory_space<vmem>>, %arg4: memref<1x8x256xf32, #tpu.memory_space<vmem>>, %arg5: memref<4x512xf32, #tpu.memory_space<vmem>>, %arg6: memref<36x256xf32, #tpu.memory_space<vmem>>) attributes {dimension_semantics = [#tpu.dimension_semantics<parallel>], iteration_bounds = array<i64: 2>, scalar_prefetch = 0 : i64, scratch_operands = 2 : i64, tpu.core_type = #tpu.core_type<tc>, window_params = [{transform_indices = @transform_0, window_bounds = array<i64: 1, 4, 256>}, {pipeline_mode = #tpu.pipeline_mode<synchronous>, transform_indices = @transform_1, window_bounds = array<i64: 8, 36>}, {pipeline_mode = #tpu.pipeline_mode<synchronous>, transform_indices = @transform_2, window_bounds = array<i64: 2, 256>}, {transform_indices = @transform_3, window_bounds = array<i64: 1, 8, 256>}]} {
    %cst = arith.constant 0.000000e+00 : f32
    %0 = vector.broadcast %cst : f32 to vector<4x128xf32>
    %c0 = arith.constant 0 : index
    %c0_0 = arith.constant 0 : index
    %1 = vector.load %arg5[%c0, %c0_0] : memref<4x512xf32, #tpu.memory_space<vmem>>, vector<4x128xf32>
    tpu.vector_store %arg5[%c0, %c0_0], %0 {strides = array<i32>} : memref<4x512xf32, #tpu.memory_space<vmem>>, vector<4x128xf32>,
    %c0_1 = arith.constant 0 : index
    %c384 = arith.constant 384 : index
    %2 = vector.load %arg5[%c0_1, %c384] : memref<4x512xf32, #tpu.memory_space<vmem>>, vector<4x128xf32>
    tpu.vector_store %arg5[%c0_1, %c384], %0 {strides = array<i32>} : memref<4x512xf32, #tpu.memory_space<vmem>>, vector<4x128xf32>,
    %c0_2 = arith.constant 0 : index
    %c0_3 = arith.constant 0 : index
    %3 = vector.load %arg3[%c0_2, %c0_3] : memref<2x256xf32, #tpu.memory_space<vmem>>, vector<1x256xf32>
    %c1 = arith.constant 1 : index
    %c0_4 = arith.constant 0 : index
    %4 = vector.load %arg3[%c1, %c0_4] : memref<2x256xf32, #tpu.memory_space<vmem>>, vector<1x256xf32>
    %c0_5 = arith.constant 0 : index
    %c0_6 = arith.constant 0 : index
    %5 = vector.load %arg2[%c0_5, %c0_6] : memref<8x36xbf16, #tpu.memory_space<vmem>>, vector<8x36xbf16>
    %c0_7 = arith.constant 0 : index
    %c0_8 = arith.constant 0 : index
    %c0_9 = arith.constant 0 : index
    %6 = vector.load %arg1[%c0_7, %c0_8, %c0_9] : memref<1x4x256xf32, #tpu.memory_space<vmem>>, vector<1x4x256xf32>
    %7 = vector.shape_cast %6 : vector<1x4x256xf32> to vector<4x256xf32>
    %c0_10 = arith.constant 0 : index
    %c128 = arith.constant 128 : index
    %8 = vector.load %arg5[%c0_10, %c128] : memref<4x512xf32, #tpu.memory_space<vmem>>, vector<4x256xf32>
    tpu.vector_store %arg5[%c0_10, %c128], %7 {strides = array<i32>} : memref<4x512xf32, #tpu.memory_space<vmem>>, vector<4x256xf32>,
    %c0_11 = arith.constant 0 : index
    %c111 = arith.constant 111 : index
    %9 = vector.load %arg5[%c0_11, %c111] : memref<4x512xf32, #tpu.memory_space<vmem>>, vector<4x256xf32>
    %10 = vector.broadcast %3 : vector<1x256xf32> to vector<4x256xf32>
    %11 = arith.mulf %9, %10 : vector<4x256xf32>
    %c0_12 = arith.constant 0 : index
    %c0_13 = arith.constant 0 : index
    %12 = vector.load %arg6[%c0_12, %c0_13] : memref<36x256xf32, #tpu.memory_space<vmem>>, vector<4x256xf32>
    tpu.vector_store %arg6[%c0_12, %c0_13], %11 {strides = array<i32>} : memref<36x256xf32, #tpu.memory_space<vmem>>, vector<4x256xf32>,
    %c0_14 = arith.constant 0 : index
    %c112 = arith.constant 112 : index
    %13 = vector.load %arg5[%c0_14, %c112] : memref<4x512xf32, #tpu.memory_space<vmem>>, vector<4x256xf32>
    %c4 = arith.constant 4 : index
    %c0_15 = arith.constant 0 : index
    %14 = vector.load %arg6[%c4, %c0_15] : memref<36x256xf32, #tpu.memory_space<vmem>>, vector<4x256xf32>
    tpu.vector_store %arg6[%c4, %c0_15], %13 {strides = array<i32>} : memref<36x256xf32, #tpu.memory_space<vmem>>, vector<4x256xf32>,
    %c0_16 = arith.constant 0 : index
    %c113 = arith.constant 113 : index
    %15 = vector.load %arg5[%c0_16, %c113] : memref<4x512xf32, #tpu.memory_space<vmem>>, vector<4x256xf32>
    %16 = vector.broadcast %4 : vector<1x256xf32> to vector<4x256xf32>
    %17 = arith.mulf %15, %16 : vector<4x256xf32>
    %c8 = arith.constant 8 : index
    %c0_17 = arith.constant 0 : index
    %18 = vector.load %arg6[%c8, %c0_17] : memref<36x256xf32, #tpu.memory_space<vmem>>, vector<4x256xf32>
    tpu.vector_store %arg6[%c8, %c0_17], %17 {strides = array<i32>} : memref<36x256xf32, #tpu.memory_space<vmem>>, vector<4x256xf32>,
    %c0_18 = arith.constant 0 : index
    %c127 = arith.constant 127 : index
    %19 = vector.load %arg5[%c0_18, %c127] : memref<4x512xf32, #tpu.memory_space<vmem>>, vector<4x256xf32>
    %20 = vector.broadcast %3 : vector<1x256xf32> to vector<4x256xf32>
    %21 = arith.mulf %19, %20 : vector<4x256xf32>
    %c12 = arith.constant 12 : index
    %c0_19 = arith.constant 0 : index
    %22 = vector.load %arg6[%c12, %c0_19] : memref<36x256xf32, #tpu.memory_space<vmem>>, vector<4x256xf32>
    tpu.vector_store %arg6[%c12, %c0_19], %21 {strides = array<i32>} : memref<36x256xf32, #tpu.memory_space<vmem>>, vector<4x256xf32>,
    %c0_20 = arith.constant 0 : index
    %c128_21 = arith.constant 128 : index
    %23 = vector.load %arg5[%c0_20, %c128_21] : memref<4x512xf32, #tpu.memory_space<vmem>>, vector<4x256xf32>
    %c16 = arith.constant 16 : index
    %c0_22 = arith.constant 0 : index
    %24 = vector.load %arg6[%c16, %c0_22] : memref<36x256xf32, #tpu.memory_space<vmem>>, vector<4x256xf32>
    tpu.vector_store %arg6[%c16, %c0_22], %23 {strides = array<i32>} : memref<36x256xf32, #tpu.memory_space<vmem>>, vector<4x256xf32>,
    %c0_23 = arith.constant 0 : index
    %c129 = arith.constant 129 : index
    %25 = vector.load %arg5[%c0_23, %c129] : memref<4x512xf32, #tpu.memory_space<vmem>>, vector<4x256xf32>
    %26 = vector.broadcast %4 : vector<1x256xf32> to vector<4x256xf32>
    %27 = arith.mulf %25, %26 : vector<4x256xf32>
    %c20 = arith.constant 20 : index
    %c0_24 = arith.constant 0 : index
    %28 = vector.load %arg6[%c20, %c0_24] : memref<36x256xf32, #tpu.memory_space<vmem>>, vector<4x256xf32>
    tpu.vector_store %arg6[%c20, %c0_24], %27 {strides = array<i32>} : memref<36x256xf32, #tpu.memory_space<vmem>>, vector<4x256xf32>,
    %c0_25 = arith.constant 0 : index
    %c143 = arith.constant 143 : index
    %29 = vector.load %arg5[%c0_25, %c143] : memref<4x512xf32, #tpu.memory_space<vmem>>, vector<4x256xf32>
    %30 = vector.broadcast %3 : vector<1x256xf32> to vector<4x256xf32>
    %31 = arith.mulf %29, %30 : vector<4x256xf32>
    %c24 = arith.constant 24 : index
    %c0_26 = arith.constant 0 : index
    %32 = vector.load %arg6[%c24, %c0_26] : memref<36x256xf32, #tpu.memory_space<vmem>>, vector<4x256xf32>
    tpu.vector_store %arg6[%c24, %c0_26], %31 {strides = array<i32>} : memref<36x256xf32, #tpu.memory_space<vmem>>, vector<4x256xf32>,
    %c0_27 = arith.constant 0 : index
    %c144 = arith.constant 144 : index
    %33 = vector.load %arg5[%c0_27, %c144] : memref<4x512xf32, #tpu.memory_space<vmem>>, vector<4x256xf32>
    %c28 = arith.constant 28 : index
    %c0_28 = arith.constant 0 : index
    %34 = vector.load %arg6[%c28, %c0_28] : memref<36x256xf32, #tpu.memory_space<vmem>>, vector<4x256xf32>
    tpu.vector_store %arg6[%c28, %c0_28], %33 {strides = array<i32>} : memref<36x256xf32, #tpu.memory_space<vmem>>, vector<4x256xf32>,
    %c0_29 = arith.constant 0 : index
    %c145 = arith.constant 145 : index
    %35 = vector.load %arg5[%c0_29, %c145] : memref<4x512xf32, #tpu.memory_space<vmem>>, vector<4x256xf32>
    %36 = vector.broadcast %4 : vector<1x256xf32> to vector<4x256xf32>
    %37 = arith.mulf %35, %36 : vector<4x256xf32>
    %c32 = arith.constant 32 : index
    %c0_30 = arith.constant 0 : index
    %38 = vector.load %arg6[%c32, %c0_30] : memref<36x256xf32, #tpu.memory_space<vmem>>, vector<4x256xf32>
    tpu.vector_store %arg6[%c32, %c0_30], %37 {strides = array<i32>} : memref<36x256xf32, #tpu.memory_space<vmem>>, vector<4x256xf32>,
    %c0_31 = arith.constant 0 : index
    %c0_32 = arith.constant 0 : index
    %39 = vector.load %arg6[%c0_31, %c0_32] : memref<36x256xf32, #tpu.memory_space<vmem>>, vector<36x256xf32>
    %40 = arith.truncf %39 : vector<36x256xf32> to vector<36x256xbf16>
    %cst_33 = arith.constant dense<0.000000e+00> : vector<8x256xf32>
    %41 = tpu.matmul %5, %40, %cst_33 {dimension_numbers = #tpu.dot_dimension_numbers<[1], [0], [0], [1], [0, 0, 1, 1], [], []>} : vector<8x36xbf16>, vector<36x256xbf16>, vector<8x256xf32> -> vector<8x256xf32>
    %cst_34 = arith.constant dense<0.000000e+00> : vector<8xf32>
    %42 = vector.multi_reduction <add>, %41, %cst_34 [1] : vector<8x256xf32> to vector<8xf32>
    %43 = vector.shape_cast %42 : vector<8xf32> to vector<8x1xf32>
    %44 = arith.mulf %41, %41 : vector<8x256xf32>
    %cst_35 = arith.constant dense<0.000000e+00> : vector<8xf32>
    %45 = vector.multi_reduction <add>, %44, %cst_35 [1] : vector<8x256xf32> to vector<8xf32>
    %46 = vector.shape_cast %45 : vector<8xf32> to vector<8x1xf32>
    %cst_36 = arith.constant 3.906250e-03 : f32
    %47 = vector.broadcast %cst_36 : f32 to vector<8x1xf32>
    %48 = arith.mulf %43, %47 : vector<8x1xf32>
    %cst_37 = arith.constant 3.906250e-03 : f32
    %49 = vector.broadcast %cst_37 : f32 to vector<8x1xf32>
    %50 = arith.mulf %46, %49 : vector<8x1xf32>
    %51 = arith.mulf %48, %48 : vector<8x1xf32>
    %52 = arith.subf %50, %51 : vector<8x1xf32>
    %cst_38 = arith.constant 0.000000e+00 : f32
    %53 = vector.broadcast %cst_38 : f32 to vector<8x1xf32>
    %54 = arith.maximumf %52, %53 : vector<8x1xf32>
    %55 = vector.broadcast %48 : vector<8x1xf32> to vector<8x256xf32>
    %56 = arith.subf %41, %55 : vector<8x256xf32>
    %cst_39 = arith.constant 9.99999974E-6 : f32
    %57 = vector.broadcast %cst_39 : f32 to vector<8x1xf32>
    %58 = arith.addf %54, %57 : vector<8x1xf32>
    %59 = math.rsqrt %58 : vector<8x1xf32>
    %60 = vector.broadcast %59 : vector<8x1xf32> to vector<8x256xf32>
    %61 = arith.mulf %56, %60 : vector<8x256xf32>
    %cst_40 = arith.constant 0.000000e+00 : f32
    %62 = vector.broadcast %cst_40 : f32 to vector<8x256xf32>
    %63 = arith.maximumf %61, %62 : vector<8x256xf32>
    %c0_41 = arith.constant 0 : index
    %c0_42 = arith.constant 0 : index
    %c0_43 = arith.constant 0 : index
    %64 = vector.load %arg4[%c0_41, %c0_42, %c0_43] : memref<1x8x256xf32, #tpu.memory_space<vmem>>, vector<1x8x256xf32>
    %65 = vector.shape_cast %64 : vector<1x8x256xf32> to vector<8x256xf32>
    %66 = vector.shape_cast %63 : vector<8x256xf32> to vector<1x8x256xf32>
    tpu.vector_store %arg4[%c0_41, %c0_42, %c0_43], %66 {strides = array<i32>} : memref<1x8x256xf32, #tpu.memory_space<vmem>>, vector<1x8x256xf32>,
    return
  }
  func.func @transform_0(%arg0: i32) -> (i32, i32, i32) {
    %c0_i32 = arith.constant 0 : i32
    %c0_i32_0 = arith.constant 0 : i32
    %c0_i32_1 = arith.constant 0 : i32
    return %arg0, %c0_i32, %c0_i32_0 : i32, i32, i32
  }
  func.func @transform_1(%arg0: i32) -> (i32, i32) {
    %c0_i32 = arith.constant 0 : i32
    %c0_i32_0 = arith.constant 0 : i32
    %c0_i32_1 = arith.constant 0 : i32
    return %c0_i32, %c0_i32_0 : i32, i32
  }
  func.func @transform_2(%arg0: i32) -> (i32, i32) {
    %c0_i32 = arith.constant 0 : i32
    %c0_i32_0 = arith.constant 0 : i32
    %c0_i32_1 = arith.constant 0 : i32
    return %c0_i32, %c0_i32_0 : i32, i32
  }
  func.func @transform_3(%arg0: i32) -> (i32, i32, i32) {
    %c0_i32 = arith.constant 0 : i32
    %c0_i32_0 = arith.constant 0 : i32
    %c0_i32_1 = arith.constant 0 : i32
    return %arg0, %c0_i32, %c0_i32_0 : i32, i32, i32
  }
}

</mosaic_0001>

<bundles_post_ra>
// kernel: tpu_custom_call.1
= control target key start
LH: loop header
LB: loop body
LE: loop exit
PB: predicated region body
PF: predicated region fallthrough
CT: control target
= control target key end

     0   :  { %8 = vsyncpa [#allocation5], 0  ;;  %s1144_s0 = inlined_call_operand.hbm [shape: f32[2,4,256], index: 0, kind: input, shape index: {}]   ;;  %s1145_s1 = inlined_call_operand.hbm [shape: bf16[8,36], index: 1, kind: input, shape index: {}]   ;;  %s1146_s2 = inlined_call_operand.vmem [shape: f32[2,256], index: 2, kind: input, shape index: {}]   ;;  %s1147_s3 = inlined_call_operand.hbm [shape: f32[2,8,256], index: 3, kind: output, shape index: {}]  }
   0x1   :  { %10 = vsyncpa [#allocation5 + $0x1], 0 }
   0x2   :  { %11 = vsyncpa [#allocation8], 0 }
   0x3   :  { %12 = vsyncpa [#allocation6], 0 }
   0x4   :  { %14 = vsyncpa [#allocation6 + $0x1], 0  ;;  %s875_s12 = smov 0   ;;  %s877_s13 = smov 0  }
   0x5   :  { %s879_s14 = smov 0   ;;  %s881_s15 = smov 0  }
   0x6 LB: > { %s896_s16 = sadd.s32 4294967295, %s840_s15   ;;  %s617_s17 = sadd.s32 4294967294, %s840_s15   ;;  %s840_s15 = sphi %s881_s15, %s1171_s15   ;;  %s836_s14 = sphi %s879_s14, %s1170_s14   ;;  %s832_s13 = sphi %s877_s13, %s1169_s13   ;;  %s828_s12 = sphi %s875_s12, %s1168_s12  }
   0x7   : > { %p40_p0 = scmp.ne.s32.totalorder %s832_s13, %s828_s12  ;;  %p1148_p1 = scmp.eq.s32.totalorder %s896_s16, 0 }
   0x8   : > { %p112_p3 = scmp.eq.s32.totalorder %s617_s17, 1  ;;  %p618_p5 = scmp.ge.s32.totalorder %s840_s15, 1 }
   0x9   : > { %p905_p4 = por %p1148_p1, %p40_p0  ;;  %p119_p7 = scmp.lt.s32.totalorder %s840_s15, 3 }
   0xa   : > { %p910_p6 = por %p112_p3, %p40_p0  ;;  %s842_s21 = smov [#allocation7]  }
   0xb   : > { %s1151_s18 = scalar_select %p905_p4, 1, 0 }
   0xc   : > { %s1152_s19 = scalar_select %p910_p6, 1, 0 }
   0xd   : > { %p915_p8 = pnand %p618_p5, %p119_p7  ;;  %s132_s22 = sshll.u32 %s842_s21, 4  ;;  %s133_s22 = int_to_ptr.vmem [resolvable:$true] %s132_s22 }
   0xe   : > { %s923_s23 = sadd.s32 1, %s840_s15   ;;  %s27_s27 = sadd.s32 1, %s836_s14 }
   0xf   : > { %s1153_s20 = scalar_select %p915_p8, 1, 0 }
  0x10   : > { %p646_p10 = pneg %p915_p8  ;;  %s24_s25 = ssub.s32 %s840_s15, %s923_s23 }
  0x11   : > { %p933_p12 = scmp.eq.s32.totalorder %s24_s25, 0  ;;  %s712_s30 = scalar_lea.hbm %s1145_s1, 64 }
  0x12   : > { %p927_p11 = pnand %p646_p10, %p1148_p1  ;;  %p713_p0 = scmp.ne.s32.totalorder %s1145_s1, %s712_s30 }
  0x13   : > { %s1155_s26 = scalar_select %p933_p12, 1, 0 }
  0x14   : > { %p714_p3 = pneg %p927_p11  ;;  %p719_p10 = scmp.lt.u32.totalorder %s712_s30, %s1145_s1 }
  0x16   : > { %p715_p5 = pnand %p714_p3, %p713_p0 }
  0x18   : > { %p716_p7 = pneg %p715_p5 }
  0x1a   : > { %p721_p9 = pnand %p719_p10, %p716_p7 }
  0x1c   : > { %724 = shalt.err (!%p721_p9)
}
  0x1d   : > { %s725_s8 = scalar_lea.vmem %s133_s22, 64  ;;  %p733_p6 = scmp.lt.s32.totalorder %s133_s22, %s133_s22 }
  0x1e   : > { %p726_p1 = scmp.ne.s32.totalorder %s133_s22, %s725_s8  ;;  %p734_p4 = scmp.lt.s32.totalorder %s725_s8, %s725_s8 }
  0x20   : > { %p728_p2 = pnand %p726_p1, %p714_p3  ;;  %p735_p8 = por %p734_p4, %p733_p6 }
  0x22   : > { %p729_p13 = pneg %p728_p2 }
  0x24   : > { %p736_p12 = pnand %p735_p8, %p729_p13 }
  0x26   : > { %739 = shalt.err (!%p736_p12)
}
  0x27   : > { %649 = dma.hbm_to_vmem [thread:$0]  (!%p927_p11), %s1145_s1, 64, %s133_s22, [#allocation8]  }
  0x28   : > { %p1156_p1 = scmp.ne.s32.totalorder %s1155_s26, 0  ;;  %p35_p2 = scmp.eq.s32.totalorder %s840_s15, 0 }
  0x29   : > { %p1157_p4 = scmp.ne.s32.totalorder %s836_s14, %s832_s13  ;;  %p1158_p6 = scmp.eq.s32.totalorder %s896_s16, 1 }
  0x2a   : > { %s959_s11 = scalar_select %p1156_p1, %s836_s14, %s27_s27  }
  0x2b   : > { %p967_p8 = por %p1158_p6, %p1157_p4  ;;  %p659_p9 = scmp.lt.s32.totalorder %s840_s15, 2 }
  0x2c   : > { %s146_s21 = sand.u32 1, %s836_s14   ;;  %p1160_p12 = pmov %p1157_p4 }
  0x2d   : > { %s621_s24 = sshll.u32 %s146_s21, 3  ;;  %s636_s25 = sshll.u32 %s840_s15, 7 }
  0x2e   : > { %p36_p13 = por %p35_p2, %p1160_p12  ;;  %s980_s22 = scalar_lea.hbm %s1144_s0, %s636_s25 }
  0x2f   : > { %s150_s26 = scalar_lea.vmem [#allocation4], %s621_s24  ;;  %s147_s4 = scalar_lea.sflag [#allocation5], %s146_s21 }
  0x30   : > { %s158_s27 = sshll.u32 %s150_s26, 4  ;;  %p982_p11 = pnand %p659_p9, %p36_p13  ;;  %s986_s27 = int_to_ptr.vmem [resolvable:$true] %s158_s27 }
  0x31   : > { %s740_s5 = scalar_lea.hbm %s980_s22, 128  ;;  %s745_s8 = scalar_lea.hbm %s1144_s0, 256 }
  0x32   : > { %p741_p0 = scmp.ne.s32.totalorder %s980_s22, %s740_s5  ;;  %p742_p3 = pneg %p982_p11 }
  0x33   : > { %p746_p10 = scmp.lt.u32.totalorder %s980_s22, %s1144_s0  ;;  %p747_p1 = scmp.lt.u32.totalorder %s745_s8, %s740_s5 }
  0x34   : > { %p743_p5 = pnand %p742_p3, %p741_p0  ;;  %p749_p4 = scmp.lt.u32.totalorder %s740_s5, %s980_s22 }
  0x35   : > { %p748_p2 = por %p747_p1, %p746_p10 }
  0x36   : > { %p744_p7 = pneg %p743_p5 }
  0x37   : > { %p750_p6 = por %p749_p4, %p748_p2 }
  0x39   : > { %p751_p9 = pnand %p750_p6, %p744_p7 }
  0x3b   : > { %754 = shalt.err (!%p751_p9)
}
  0x3c   : > { %s755_s21 = scalar_lea.vmem %s986_s27, 128  ;;  %s843_s24 = smov [#allocation4]  }
  0x3d   : > { %p756_p12 = scmp.ne.s32.totalorder %s986_s27, %s755_s21  ;;  %s760_s25 = sshll.u32 %s843_s24, 4  ;;  %s761_s25 = int_to_ptr.vmem [resolvable:$false] %s760_s25 }
  0x3e   : > { %s762_s28 = scalar_lea.vmem %s761_s25, 256  ;;  %p763_p5 = scmp.lt.s32.totalorder %s986_s27, %s761_s25 }
  0x3f   : > { %p758_p13 = pnand %p756_p12, %p742_p3  ;;  %p764_p10 = scmp.lt.s32.totalorder %s762_s28, %s755_s21 }
  0x41   : > { %p759_p0 = pneg %p758_p13  ;;  %p765_p1 = por %p764_p10, %p763_p5 }
  0x43   : > { %p766_p2 = pnand %p765_p1, %p759_p0 }
  0x45   : > { %769 = shalt.err (!%p766_p2)
}
  0x46   : > { %653 = dma.hbm_to_vmem [thread:$0]  (!%p982_p11), %s980_s22, 128, %s986_s27, %s147_s4  }
  0x47   : > { %p1162_p7 = scmp.ne.s32.totalorder %s1153_s20, 0 }
  0x48   : > { %s1016_s29 = sand.u32 (!%p1162_p7), 1, %s832_s13   ;;  %p1163_p3 = scmp.ne.s32.totalorder (!%p1162_p7), %s1151_s18, 0 }
  0x49   : > { %167 = sbr.rel (%p1162_p7) target bundleno = 772 (0x304), region = 32  ;;  %s625_s26 = sshll.u32 (!%p1162_p7), %s1016_s29, 3 }
  0x4a   : > { %s170_s5 = scalar_lea.sflag (!%p1162_p7), [#allocation5], %s1016_s29  ;;  %s173_s6 = scalar_lea.vmem (!%p1162_p7), [#allocation4], %s625_s26 }
  0x50   : > { %815 = dma.done.wait (%p1163_p3), %s170_s5, 128  }
  0x51   : > { %817 = vsyncadd (%p1163_p3), %s170_s5, 4294967168  ;;  %p1164_p4 = scmp.eq.s32.totalorder %s896_s16, 0 }
  0x53   : > { %819 = dma.done.wait (%p1164_p4), [#allocation8], 64   ;;  %p1165_p11 = pmov %p1164_p4 }
  0x54   : > { %v212_v0 = vlaneseq  ;;  %v844_v1 = vmov 0.0   ;;  %v203_v5 = vld [vmem:[%s1146_s2] ss:$2 sm:$0x3]  ;;  %s845_s30 = smov 127   ;;  %s846_s4 = smov 111  }
  0x55   : > { %821 = vsyncadd (%p1165_p11), [#allocation8], 4294967232  ;;  %201 = vst [vmem:[#allocation2] sm:$0xf] %v844_v1  ;;  %v1034_v11 = vld [vmem:[%s173_s6] sm:$0xff]  ;;  %s847_s7 = smov 113  }
  0x56   : > { %202 = vst [vmem:[#allocation2 + $0xc] sm:$0xf] %v844_v1  ;;  %v213_v2 = vshrl.u32 %v212_v0, 7  ;;  %v628_v6 = vld [vmem:[%s1146_s2 + $0x1] ss:$2 sm:$0x3]  ;;  %v391_v17 = vcombine.low %v1034_v11, %v1034_v11  ;;  %v332_v46 = vcombine.high %v1034_v11, %v1034_v11 }
  0x57   : > { %208 = vst [vmem:[#allocation2 + $0x4] sm:$0xff] %v1034_v11  ;;  %334 = vst [vmem:[#allocation3 + $0x20] sm:$0xf] %v1034_v11  ;;  %s848_s8 = smov 15   ;;  %s849_s9 = smov 1   ;;  %vm307_vm0 = vcmask 1039360  }
  0x58   : > { %v214_v3 = vsub.s32 0, %v213_v2  ;;  %v218_v4 = vsub.s32 1, %v213_v2  ;;  %s850_s10 = smov 17   ;;  %s851_s21 = smov 16   ;;  %vm224_vm1 = vcmask 908288   ;;  %vm280_vm2 = vcmask 924672  }
  0x59   : > { %s852_s24 = smov 112   ;;  %vm295_vm3 = vcmask 121856   ;;  %vm323_vm4 = vcmask 7168   ;;  %vm258_vm5 = vcmask 130048   ;;  %335 = vst [vmem:[#allocation3 + $0x28] sm:$0xf] %v332_v46 }
  0x5a   : > { %v215_v7 = vrot.slane %v203_v5, %v214_v3  ;;  %v219_v8 = vrot.slane %v203_v5, %v218_v4  ;;  %v271_v9 = vrot.slane %v628_v6, %v214_v3  ;;  %v275_v10 = vrot.slane %v628_v6, %v218_v4  ;;  %s627_s25 = sshll.u32 %s1016_s29, 4  ;;  %s637_s28 = sshll.u32 %s896_s16, 8 }
  0x5b   : > { %vm399_vm6 = vcmask 916480   ;;  %vm239_vm7 = vcmask 138240   ;;  %vm451_vm8 = vcmask 1041408   ;;  %vm447_vm9 = vcmask 293888   ;;  %s199_s26 = scalar_lea.vmem [#allocation9], %s627_s25  ;;  %s1100_s22 = scalar_lea.hbm %s1147_s3, %s637_s28 }
  0x5c   : > { %v220_v12 = vcombine.low %v215_v7, %v219_v8  ;;  %v276_v13 = vcombine.low %v271_v9, %v275_v10  ;;  %v853_v10 = vmov 0   ;;  %s537_s5 = sshll.u32 %s199_s26, 4  ;;  %s523_s27 = scalar_lea.sflag [#allocation6], %s1016_s29  ;;  %s1102_s5 = int_to_ptr.vmem [resolvable:$true] %s537_s5 }
  0x5d   : > { %v708_v18 = vld [vmem:[#allocation2 + $0xc] ss:$0 sps:$4 sm:$0xff]   ;;  %490 = vmatprep.mubr.bf16.mxu0 %v853_v10  ;;  %s770_s16 = scalar_lea.vmem %s1102_s5, 256  ;;  %s854_s18 = smov [#allocation9]  }
  0x5e   : > { %304 = vrot.lane.b32.xlu1 %v220_v12, %s845_s30  ;;  %221 = vrot.lane.b32.xlu0 %v220_v12, %s846_s4  ;;  %v705_v14 = vld [vmem:[#allocation2 + $0x8] ss:$0 sps:$4 sm:$0xff]   ;;  %v246_v15 = vld [vmem:[#allocation2] sm:$0xff]  ;;  %v363_v33 = vld [vmem:[#allocation2 + $0xc] sm:$0xf]  ;;  %p771_p6 = scmp.ne.s32.totalorder %s1102_s5, %s770_s16 }
  0x5f   : > { %v250_v16 = vcombine.low %v246_v15, %v246_v15  ;;  %v210_v20 = vld [vmem:[#allocation2 + $0x8] sm:$0xf]  ;;  %v337_v51 = vld [vmem:[#allocation2 + $0xc] sm:$0xf] }
  0x60   : > { %v266_v27 = vld [vmem:[#allocation2 + $0x8] sm:$0xf]  ;;  %v407_v6 = vld [vmem:[#allocation2 + $0xc] sm:$0xf]  ;;  %p772_p9 = pnand %p771_p6, %p967_p8 }
  0x61   : > { %v303_v41 = vld [vmem:[#allocation2 + $0x8] sm:$0xf] }
  0x62   : > { %277 = vrot.lane.b32.xlu0 %v276_v13, %s847_s7  ;;  %364 = vrot.lane.b32.xlu1 %v220_v12, %s848_s8  ;;  %p773_p12 = pneg %p772_p9 }
  0x66   : > { %338 = vrot.lane.b32.xlu0 %v276_v13, %s849_s9  ;;  %408 = vrot.lane.b32.xlu1 %v276_v13, %s850_s10 }
  0x6a   : > { %256 = vrot.lane.b32.xlu1 %v705_v14, %s851_s21  ;;  %254 = vrot.lane.b32.xlu0 %v246_v15, %s851_s21 }
  0x6e   : > { %395 = vrot.lane.b32.xlu0 %v1034_v11, %s852_s24  ;;  %252 = vrot.lane.b32.xlu1 %v250_v16, %s851_s21 }
  0x72   : > { %393 = vrot.lane.b32.xlu0 %v391_v17, %s852_s24  ;;  %397 = vrot.lane.b32.xlu1 %v708_v18, %s852_s24 }
  0xd0   : > { %v305_v19 = vpop.permute.xlu1 %304  ;;  %v222_v21 = vpop.permute.xlu0 %221 }
  0xd1   : > { %v306_v22 = vrot.slane %v305_v19, 4  ;;  %v223_v23 = vrot.slane %v222_v21, 4 }
  0xd3   : > { %v308_v24 = vsel %vm307_vm0, %v306_v22, %v305_v19  ;;  %v229_v25 = vmul.f32 %v223_v23, %v210_v20  ;;  %v225_v30 = vsel %vm224_vm1, %v223_v23, %v222_v21  ;;  %v312_v49 = vmul.f32 %v306_v22, %v303_v41 }
  0xd4   : > { %v1048_v26 = vmul.f32 %v308_v24, %v246_v15  ;;  %v278_v28 = vpop.permute.xlu0 %277  ;;  %v365_v29 = vpop.permute.xlu1 %364  ;;  %v228_v35 = vmul.f32 %v246_v15, %v225_v30 }
  0xd5   : > { %v279_v31 = vrot.slane %v278_v28, 4  ;;  %237 = vrot.lane.b32.xlu1 %v229_v25, %s850_s10  ;;  %v366_v32 = vrot.slane %v365_v29, 4  ;;  %v316_v57 = vcombine.low %v312_v49, %v312_v49 }
  0xd6   : > { %319 = vrot.lane.b32.xlu0 %v1048_v26, %s849_s9  ;;  %v232_v58 = vcombine.high %v228_v35, %v228_v35  ;;  %v315_v3 = vcombine.low %v1048_v26, %v1048_v26 }
  0xd7   : > { %v285_v34 = vmul.f32 %v279_v31, %v266_v27  ;;  %v281_v38 = vsel %vm280_vm2, %v279_v31, %v278_v28  ;;  %v371_v39 = vmul.f32 %v366_v32, %v363_v33  ;;  %v367_v43 = vsel %vm295_vm3, %v366_v32, %v365_v29 }
  0xd8   : > { %v339_v36 = vpop.permute.xlu0 %338  ;;  %v409_v37 = vpop.permute.xlu1 %408  ;;  %v284_v42 = vmul.f32 %v281_v38, %v246_v15  ;;  %v370_v50 = vmul.f32 %v367_v43, %v1034_v11 }
  0xd9   : > { %293 = vrot.lane.b32.xlu1 %v285_v34, %s848_s8  ;;  %v340_v40 = vrot.slane %v339_v36, 4  ;;  %v410_v63 = vrot.slane %v409_v37, 4 }
  0xda   : > { %233 = vrot.lane.b32.xlu0 %v228_v35, %s850_s10  ;;  %v288_v1 = vcombine.high %v284_v42, %v284_v42  ;;  %v374_v4 = vcombine.high %v370_v50, %v370_v50 }
  0xdb   : > { %v341_v47 = vsel %vm323_vm4, %v340_v40, %v339_v36  ;;  %v345_v56 = vmul.f32 %v340_v40, %v337_v51  ;;  %v411_v2 = vsel %vm239_vm7, %v410_v63, %v409_v37  ;;  %v415_v8 = vmul.f32 %v410_v63, %v407_v6 }
  0xdc   : > { %v257_v44 = vpop.permute.xlu1 %256  ;;  %v255_v45 = vpop.permute.xlu0 %254  ;;  %v344_v52 = vmul.f32 %v341_v47, %v1034_v11  ;;  %v414_v5 = vmul.f32 %v411_v2, %v1034_v11 }
  0xdd   : > { %379 = vrot.lane.b32.xlu1 %v371_v39, %s847_s7  ;;  %v260_v48 = vsel %vm258_vm5, %v255_v45, %v257_v44  ;;  %v349_v0 = vcombine.low %v345_v56, %v345_v56 }
  0xde   : > { %289 = vrot.lane.b32.xlu0 %v284_v42, %s848_s8  ;;  %264 = vst [vmem:[#allocation3 + $0x8] sm:$0xf0] %v260_v48  ;;  %v348_v7 = vcombine.low %v344_v52, %v344_v52  ;;  %v418_v9 = vcombine.high %v414_v5, %v414_v5 }
  0xe0   : > { %v396_v53 = vpop.permute.xlu0 %395  ;;  %v253_v54 = vpop.permute.xlu1 %252 }
  0xe1   : > { %375 = vrot.lane.b32.xlu1 %v370_v50, %s847_s7  ;;  %v259_v55 = vsel %vm258_vm5, %v253_v54, %v255_v45 }
  0xe2   : > { %352 = vrot.lane.b32.xlu0 %v344_v52, %s845_s30  ;;  %263 = vst [vmem:[#allocation3] sm:$0xf0] %v259_v55 }
  0xe4   : > { %v394_v59 = vpop.permute.xlu0 %393  ;;  %v398_v60 = vpop.permute.xlu1 %397 }
  0xe5   : > { %321 = vrot.lane.b32.xlu1 %v316_v57, %s849_s9  ;;  %v400_v61 = vsel %vm399_vm6, %v394_v59, %v396_v53  ;;  %v401_v62 = vsel %vm399_vm6, %v396_v53, %v398_v60 }
  0xe6   : > { %235 = vrot.lane.b32.xlu0 %v232_v58, %s850_s10  ;;  %404 = vst [vmem:[#allocation3 + $0x30] sm:$0xf0] %v400_v61  ;;  %405 = vst [vmem:[#allocation3 + $0x38] sm:$0xf0] %v401_v62  ;;  %v206_v58 = vld [vmem:[#allocation7] sm:$0xf] }
  0xe9   : > { %354 = vrot.lane.b32.xlu1 %v349_v0, %s845_s30 }
  0xea   : > { %291 = vrot.lane.b32.xlu0 %v288_v1, %s848_s8 }
  0xed   : > { %317 = vrot.lane.b32.xlu1 %v315_v3, %s849_s9 }
  0xee   : > { %377 = vrot.lane.b32.xlu0 %v374_v4, %s847_s7 }
  0xf1   : > { %419 = vrot.lane.b32.xlu1 %v414_v5, %s846_s4 }
  0xf2   : > { %350 = vrot.lane.b32.xlu0 %v348_v7, %s845_s30  ;;  %s774_s30 = sshll.u32 %s854_s18, 4  ;;  %s775_s30 = int_to_ptr.vmem [resolvable:$false] %s774_s30 }
  0xf3   : > { %p777_p13 = scmp.lt.s32.totalorder %s1102_s5, %s775_s30 }
  0xf5   : > { %423 = vrot.lane.b32.xlu1 %v415_v8, %s846_s4 }
  0xf6   : > { %421 = vrot.lane.b32.xlu0 %v418_v9, %s846_s4  ;;  %s776_s4 = scalar_lea.vmem %s775_s30, 512 }
  0xf7   : > { %p778_p0 = scmp.lt.s32.totalorder %s776_s4, %s770_s16 }
  0xf9   : > { %p779_p5 = por %p778_p0, %p777_p13 }
  0xfb   : > { %p780_p10 = pnand %p779_p5, %p773_p12 }
 0x147   : > { %v238_v12 = vpop.permute.xlu1 %237 }
 0x148   : > { %v320_v11 = vpop.permute.xlu0 %319 }
 0x14b   : > { %v294_v13 = vpop.permute.xlu1 %293 }
 0x14c   : > { %v234_v14 = vpop.permute.xlu0 %233 }
 0x14f   : > { %v380_v15 = vpop.permute.xlu1 %379 }
 0x150   : > { %v290_v16 = vpop.permute.xlu0 %289 }
 0x153   : > { %v376_v17 = vpop.permute.xlu1 %375 }
 0x154   : > { %v353_v18 = vpop.permute.xlu0 %352 }
 0x157   : > { %v322_v19 = vpop.permute.xlu1 %321 }
 0x158   : > { %v325_v20 = vsel %vm323_vm4, %v320_v11, %v322_v19  ;;  %v236_v21 = vpop.permute.xlu0 %235 }
 0x159   : > { %329 = vst [vmem:[#allocation3 + $0x18] sm:$0xf0] %v325_v20  ;;  %v240_v22 = vsel %vm239_vm7, %v234_v14, %v236_v21  ;;  %v241_v23 = vsel %vm239_vm7, %v236_v21, %v238_v12 }
 0x15a   : > { %244 = vst [vmem:[#allocation3] sm:$0xf] %v240_v22  ;;  %245 = vst [vmem:[#allocation3 + $0x8] sm:$0xf] %v241_v23 }
 0x15b   : > { %v355_v24 = vpop.permute.xlu1 %354 }
 0x15c   : > { %v357_v25 = vsel %vm307_vm0, %v353_v18, %v355_v24  ;;  %v292_v26 = vpop.permute.xlu0 %291 }
 0x15d   : > { %361 = vst [vmem:[#allocation3 + $0x28] sm:$0xf0] %v357_v25  ;;  %v296_v27 = vsel %vm295_vm3, %v290_v16, %v292_v26  ;;  %v297_v28 = vsel %vm295_vm3, %v292_v26, %v294_v13 }
 0x15e   : > { %300 = vst [vmem:[#allocation3 + $0x10] sm:$0xf] %v296_v27  ;;  %301 = vst [vmem:[#allocation3 + $0x18] sm:$0xf] %v297_v28 }
 0x15f   : > { %v318_v29 = vpop.permute.xlu1 %317 }
 0x160   : > { %v324_v30 = vsel %vm323_vm4, %v318_v29, %v320_v11  ;;  %v378_v31 = vpop.permute.xlu0 %377 }
 0x161   : > { %328 = vst [vmem:[#allocation3 + $0x10] sm:$0xf0] %v324_v30  ;;  %v381_v32 = vsel %vm280_vm2, %v376_v17, %v378_v31  ;;  %v382_v33 = vsel %vm280_vm2, %v378_v31, %v380_v15  ;;  %v432_v37 = vld [vmem:[#allocation3 + $0x8] sm:$0xff]  ;;  %v431_v42 = vld [vmem:[#allocation3] sm:$0xff] }
 0x162   : > { %385 = vst [vmem:[#allocation3 + $0x30] sm:$0xf] %v381_v32  ;;  %386 = vst [vmem:[#allocation3 + $0x38] sm:$0xf] %v382_v33 }
 0x163   : > { %v420_v34 = vpop.permute.xlu1 %419 }
 0x164   : > { %v351_v35 = vpop.permute.xlu0 %350  ;;  %v436_v47 = vld [vmem:[#allocation3 + $0x28] sm:$0xff] }
 0x165   : > { %v356_v36 = vsel %vm307_vm0, %v351_v35, %v353_v18  ;;  %v434_v38 = vld [vmem:[#allocation3 + $0x18] sm:$0xff] }
 0x166   : > { %360 = vst [vmem:[#allocation3 + $0x20] sm:$0xf0] %v356_v36  ;;  %v442_v39 = vpack.c.bf16 %v434_v38, %v432_v37 }
 0x167   : > { %v424_v40 = vpop.permute.xlu1 %423 }
 0x168   : > { %458 = vmatprep.subr.bf16.mxu0 %v442_v39  ;;  %v422_v41 = vpop.permute.xlu0 %421  ;;  %v433_v43 = vld [vmem:[#allocation3 + $0x10] sm:$0xff] }
 0x169   : > { %v425_v44 = vsel %vm224_vm1, %v420_v34, %v422_v41  ;;  %v426_v45 = vsel %vm224_vm1, %v422_v41, %v424_v40  ;;  %v441_v46 = vpack.c.bf16 %v433_v43, %v431_v42  ;;  %v438_v48 = vld [vmem:[#allocation3 + $0x38] sm:$0xff]  ;;  %v437_v51 = vld [vmem:[#allocation3 + $0x30] sm:$0xff] }
 0x16a   : > { %429 = vst [vmem:[#allocation3 + $0x40] sm:$0xf] %v425_v44  ;;  %430 = vst [vmem:[#allocation3 + $0x48] sm:$0xf] %v426_v45  ;;  %v444_v49 = vpack.c.bf16 %v438_v48, %v436_v47 }
 0x16b   : > { %459 = vmatpush1.bf16.msra.mxu0 %v441_v46 }
 0x16c   : > { %460 = vmatprep.subr.bf16.mxu0 %v444_v49 }
 0x16d   : > { %v435_v50 = vld [vmem:[#allocation3 + $0x20] sm:$0xff] }
 0x16e   : > { %v443_v52 = vpack.c.bf16 %v437_v51, %v435_v50 }
 0x170   : > { %461 = vmatpush1.bf16.msra.mxu0 %v443_v52 }
 0x171   : > { %v440_v53 = vld [vmem:[#allocation3 + $0x48] sm:$0xf]  ;;  %v439_v54 = vld [vmem:[#allocation3 + $0x40] sm:$0xf] }
 0x172   : > { %v446_v55 = vpack.c.bf16 %v440_v53, %v440_v53  ;;  %v445_v56 = vpack.c.bf16 %v439_v54, %v439_v54 }
 0x174   : > { %629 = vmatprep.subr.msk.bf16.mxu0 %vm451_vm8, %v446_v55  ;;  %v453_v57 = vsel %vm451_vm8, %v445_v56, 0 }
 0x175   : > { %463 = vmatpush1.bf16.msra.mxu0 %v453_v57 }
 0x178   : > { %630 = vmatmul.mubr.msk.bf16.vlgmr.msra.gmra.mrb[0].mxu0 %vm447_vm9, %v206_v58 }
 0x24b   : > { %v492_v59 = vpop.f32.mrb[0].mxu0 }
 0x24c   : > { %v494_v60 = vpop.f32.mrb[1].mxu0  ;;  %v502_v61 = vmul.f32 %v492_v59, %v492_v59 }
 0x24d   : > { %v496_v62 = vpop.f32.mrb[2].mxu0  ;;  %v499_v63 = vadd.f32 %v494_v60, %v492_v59  ;;  %v503_v0 = vmul.f32 %v494_v60, %v494_v60 }
 0x24e   : > { %v497_v1 = vpop.f32.mrb[3].mxu0 }
 0x24f   : > { %500 = vadd.xlane.f32.xlu0 %v499_v63  ;;  %v504_v2 = vadd.f32 %v503_v0, %v502_v61 }
 0x251   : > { %505 = vadd.xlane.f32.xlu1 %v504_v2 }
 0x2dc   : > { %v501_v3 = vpop.xlane.xlu0 %500 }
 0x2dd   : > { %v507_v4 = vmul.f32 0.00390625, %v501_v3 }
 0x2de   : > { %v506_v5 = vpop.xlane.xlu1 %505 }
 0x2df   : > { %v508_v6 = vmul.f32 0.00390625, %v506_v5  ;;  %v509_v7 = vmul.f32 %v507_v4, %v507_v4  ;;  %v512_v12 = vsub.f32 %v492_v59, %v507_v4  ;;  %v513_v11 = vsub.f32 %v494_v60, %v507_v4 }
 0x2e1   : > { %v510_v8 = vsub.f32 %v508_v6, %v509_v7 }
 0x2e3   : > { %v511_v9 = vmax.f32 %v510_v8, 0.0 }
 0x2e5   : > { %v514_v10 = vadd.f32 1e-05, %v511_v9 }
 0x2e7   : > { %710 = vrsqrt.f32 %v514_v10 }
 0x2f1   : > { %v711_v13 = vpop.eup %710 }
 0x2f2   : > { %v516_v14 = vmul.f32 %v711_v13, %v512_v12  ;;  %v517_v15 = vmul.f32 %v711_v13, %v513_v11 }
 0x2f4   : > { %v518_v16 = vmax.f32 %v516_v14, 0.0  ;;  %v519_v17 = vmax.f32 %v517_v15, 0.0 }
 0x2f6   : > { %520 = vst [vmem:[%s199_s26] sm:$0xff] %v518_v16  ;;  %521 = vst [vmem:[%s199_s26 + $0x8] sm:$0xff] %v519_v17 }
 0x2f7   : > { %783 = shalt.err (!%p780_p10)
}
 0x2f8   : > { %s784_s29 = scalar_lea.hbm %s1100_s22, 256  ;;  %s788_s9 = scalar_lea.hbm %s1147_s3, 512 }
 0x2f9   : > { %p785_p1 = scmp.ne.s32.totalorder %s1100_s22, %s784_s29  ;;  %p789_p3 = scmp.lt.u32.totalorder %s1100_s22, %s1147_s3 }
 0x2fa   : > { %p790_p4 = scmp.lt.u32.totalorder %s788_s9, %s784_s29  ;;  %p792_p6 = scmp.lt.u32.totalorder %s784_s29, %s1100_s22 }
 0x2fb   : > { %p786_p2 = pnand %p785_p1, %p967_p8 }
 0x2fc   : > { %p791_p11 = por %p790_p4, %p789_p3 }
 0x2fd   : > { %p787_p7 = pneg %p786_p2 }
 0x2fe   : > { %p793_p9 = por %p792_p6, %p791_p11 }
 0x300   : > { %p794_p12 = pnand %p793_p9, %p787_p7 }
 0x302   : > { %797 = shalt.err (!%p794_p12)
}
 0x303   : > { %644 = dma.vmem_to_hbm [thread:$0]  (%p967_p8), %s1102_s5, 256, %s1100_s22, %s523_s27  }
 0x304 PF: > { %s549_s24 = sand.u32 1, %s828_s12   ;;  %p1166_p13 = scmp.ne.s32.totalorder %s1152_s19, 0 }
 0x305   : > { %p1167_p0 = scmp.ge.s32.totalorder %s840_s15, 2  ;;  %s550_s25 = scalar_lea.sflag [#allocation6], %s549_s24 }
 0x307   : > { %p655_p5 = pnand %p1167_p0, %p1166_p13 }
 0x309   : > { %823 = dma.done.wait (!%p655_p5), %s550_s25, 256  }
 0x30a   : > { %825 = vsyncadd (!%p655_p5), %s550_s25, 4294967040  ;;  %p17_p10 = scmp.ge.s32.totalorder %s923_s23, 4   ;;  %s1168_s12 = smov %s832_s13 }
 0x30b   : > { %s1169_s13 = smov %s836_s14  ;;  %s1170_s14 = smov %s959_s11 }
 0x30c   : > { %s1171_s15 = smov %s923_s23  ;;  %19 = sbr.rel (!%p17_p10) target bundleno = 6 (0x6), region = 82 }
 0x313   :  { %555 = vsyncpa [#allocation5], 1 }
 0x314   :  { %557 = vsyncpa [#allocation5 + $0x1], 1 }
 0x315   :  { %558 = vsyncpa [#allocation8], 1 }
 0x316   :  { %559 = vsyncpa [#allocation6], 1 }
 0x317   :  { %561 = vsyncpa [#allocation6 + $0x1], 1 }

</bundles_post_ra>
